<compile_context>
chip_gen: v7x
topology: tpu7x:2x2x1
jax: 0.10.0
libtpu: 0.0.40
codegen_flags: <defaults>
</compile_context>

<pallas_src>
import jax
import jax.numpy as jnp
from jax.experimental import pallas as pl
from jax.experimental.pallas import tpu as pltpu

# Logical (PyTorch) dims and TPU-padded hidden dims.
F_IN, H1, H2, F_OUT = 22, 100, 22, 1
H1_PAD, H2_PAD = 128, 128
LANES = 128                       # packed-output width / batch rows per output row

DEFAULT_B_TILE = 8192             # max batch rows per grid step (multiple of 1024)
VMEM_LIMIT_BYTES = 32 * 1024 * 1024


def _mlp_kernel(x_ref, w1_ref, b1_ref, w2_ref, b2_ref, w3_ref, b3_ref, o_ref):
    """One batch tile: 2 MXU matmuls (bf16 in, f32 acc) + bias/ReLU on VPU,
    then layer 3 as a VPU multiply + lane reduce into a packed [tiles, 128] output."""
    x = x_ref[...]                                                       # (b_tile, 22) f32
    h1 = jnp.dot(x.astype(jnp.bfloat16), w1_ref[...],
                 preferred_element_type=jnp.float32) + b1_ref[...]       # (b_tile, 128) f32
    h1 = jnp.maximum(h1, 0.0)
    h2 = jnp.dot(h1.astype(jnp.bfloat16), w2_ref[...],
                 preferred_element_type=jnp.float32) + b2_ref[...]       # (b_tile, 128) f32
    h2 = jnp.maximum(h2, 0.0)

    # Layer 3: out[r] = sum_k h2[r, k] * w3[k] + b3.  Split the batch dim so 128
    # consecutive rows land on the lane axis of the packed output (leading-dim
    # reshape -> no relayout; the lane reduce uses the otherwise-idle XLU slot).
    t = h2.shape[0] // LANES
    h2_r = h2.reshape(t, LANES, H2_PAD)                                  # (t, 128, 128)
    o_ref[...] = jnp.sum(h2_r * w3_ref[...], axis=-1) + b3_ref[...]      # (t, 128) f32


def _choose_tiling(B, b_tile_max):
    """Pick (tiles_per_step, n_steps).  tiles are 128 batch rows each.
    Multi-step grids keep tiles_per a multiple of 8 (sublane rule on the packed
    output); small batches use a single full-array block (always legal)."""
    b_tile_max = max(1024, (b_tile_max // 1024) * 1024)
    n128 = pl.cdiv(B, 128)                      # 128-row output blocks needed
    if n128 < 16:
        return n128, 1                          # single block == full output array
    max_tiles_per = b_tile_max // 128
    n_steps = max(2, pl.cdiv(n128, max_tiles_per))   # >=2 so both v7x TCs get work
    tiles_per = 8 * pl.cdiv(pl.cdiv(n128, n_steps), 8)
    n_steps = pl.cdiv(n128, tiles_per)
    return tiles_per, n_steps


def tiny_model_forward(x, padded_params, *, b_tile=DEFAULT_B_TILE):
    """x: [B, 22] float32 -> [B, 1] float32 (forward pass of TinyModel)."""
    w1, b1, w2, b2, w3, b3 = padded_params
    B = x.shape[0]
    x = x.astype(jnp.float32)

    tiles_per, n_steps = _choose_tiling(B, b_tile)
    bt = tiles_per * LANES                       # batch rows per grid step
    B_pad = n_steps * bt

    # Only zero-pad the batch dim when B isn't already a tile multiple; no feature pad.
    x_in = x if B_pad == B else jnp.zeros((B_pad, F_IN), jnp.float32).at[:B].set(x)

    const2 = lambda i: (0, 0)   # weights/biases: same block every step -> DMA'd once, resident
    weight_bytes = sum(int(a.size) * a.dtype.itemsize for a in padded_params)
    cost = pl.CostEstimate(
        flops=2 * B_pad * (F_IN * H1_PAD + H1_PAD * H2_PAD + H2_PAD),
        transcendentals=0,
        bytes_accessed=B_pad * F_IN * 4 + B_pad * 4 + weight_bytes,
    )

    out = pl.pallas_call(
        _mlp_kernel,
        out_shape=jax.ShapeDtypeStruct((B_pad // LANES, LANES), jnp.float32),
        grid=(n_steps,),
        in_specs=[
            # x streams through VMEM tile by tile (auto double-buffered pipeline).
            pl.BlockSpec((bt, F_IN), lambda i: (i, 0)),
            pl.BlockSpec((F_IN, H1_PAD), const2),     # bf16
            pl.BlockSpec((1, H1_PAD), const2),        # f32
            pl.BlockSpec((H1_PAD, H2_PAD), const2),   # bf16
            pl.BlockSpec((1, H2_PAD), const2),        # f32
            pl.BlockSpec((1, H2_PAD), const2),        # w3 row, f32
            pl.BlockSpec((1, LANES), const2),         # b3 replicated, f32
        ],
        out_specs=pl.BlockSpec((tiles_per, LANES), lambda i: (i, 0)),
        compiler_params=pltpu.CompilerParams(
            dimension_semantics=("parallel",),
            vmem_limit_bytes=VMEM_LIMIT_BYTES,
        ),
        cost_estimate=cost,
    )(x_in, w1, b1, w2, b2, w3, b3)

    # Unpack the lane-dense slab back to the logical [B, 1] result.
    return out.reshape(B_pad, 1)[:B]


def init_params(key):
    """Deterministic init matching TinyModel's nn.Linear shapes (unpadded, [in, out])."""
    ks = jax.random.split(key, 6)

    def uniform_like(k, shape, fan_in):
        bound = 1.0 / jnp.sqrt(fan_in)
        return jax.random.uniform(k, shape, jnp.float32, -bound, bound)

    w1 = uniform_like(ks[0], (F_IN, H1), float(F_IN))
    b1 = uniform_like(ks[1], (H1,), float(F_IN))
    w2 = uniform_like(ks[2], (H1, H2), float(H1))
    b2 = uniform_like(ks[3], (H2,), float(H1))
    w3 = uniform_like(ks[4], (H2, F_OUT), float(H2))
    b3 = uniform_like(ks[5], (F_OUT,), float(H2))
    return (w1, b1, w2, b2, w3, b3)


def pad_params(params):
    """Zero-pad / relayout params once: bf16 MXU weights, f32 biases, w3 as a row vector."""
    w1, b1, w2, b2, w3, b3 = params
    w1p = jnp.zeros((F_IN, H1_PAD), jnp.bfloat16).at[:, :H1].set(w1.astype(jnp.bfloat16))
    b1p = jnp.zeros((1, H1_PAD), jnp.float32).at[0, :H1].set(b1)
    w2p = jnp.zeros((H1_PAD, H2_PAD), jnp.bfloat16).at[:H1, :H2].set(w2.astype(jnp.bfloat16))
    b2p = jnp.zeros((1, H2_PAD), jnp.float32).at[0, :H2].set(b2)
    w3p = jnp.zeros((1, H2_PAD), jnp.float32).at[0, :H2].set(w3[:, 0])   # row layout (VPU reduce)
    b3p = jnp.full((1, LANES), b3[0], jnp.float32)                       # replicated scalar bias
    return (w1p, b1p, w2p, b2p, w3p, b3p)


def reference_forward(x, params):
    """Pure-JAX f32 reference on the unpadded params."""
    w1, b1, w2, b2, w3, b3 = params
    h1 = jnp.maximum(x @ w1 + b1, 0.0)
    h2 = jnp.maximum(h1 @ w2 + b2, 0.0)
    return h2 @ w3 + b3


if __name__ == "__main__":
    key = jax.random.PRNGKey(0)
    k_params, k_x1, k_x2, k_x3 = jax.random.split(key, 4)

    raw_params = init_params(k_params)
    params = pad_params(raw_params)

    # bf16 MXU path -> loosened tolerances vs. the f32 reference.
    ATOL, RTOL = 5e-2, 5e-2

    # Tiny batch (single 128-row block).
    x = jax.random.normal(k_x1, (8, F_IN), jnp.float32)
    out = jax.block_until_ready(tiny_model_forward(x, params))
    ref = reference_forward(x, raw_params)
    assert out.shape == (8, 1), out.shape
    assert jnp.allclose(out, ref, atol=ATOL, rtol=RTOL), "mismatch vs. JAX reference (B=8)"

    # Ragged batch, single-step grid (block == full array path).
    x2 = jax.random.normal(k_x2, (300, F_IN), jnp.float32)
    out2 = jax.block_until_ready(tiny_model_forward(x2, params))
    ref2 = reference_forward(x2, raw_params)
    assert out2.shape == (300, 1), out2.shape
    assert jnp.allclose(out2, ref2, atol=ATOL, rtol=RTOL), "mismatch vs. JAX reference (B=300)"

    # Ragged batch, multi-step grid (exercises pipelining + batch zero-pad + packed output).
    x3 = jax.random.normal(k_x3, (2100, F_IN), jnp.float32)
    out3 = jax.block_until_ready(tiny_model_forward(x3, params))
    ref3 = reference_forward(x3, raw_params)
    assert out3.shape == (2100, 1), out3.shape
    assert jnp.allclose(out3, ref3, atol=ATOL, rtol=RTOL), "mismatch vs. JAX reference (B=2100)"

    print("KERNEL_OK")
</pallas_src>

<mosaic_0001>
module attributes {stable_mosaic.version = 11 : i64} {
  func.func @_mlp_kernel(%arg0: i32, %arg1: memref<128x22xf32, #tpu.memory_space<vmem>>, %arg2: memref<22x128xbf16, #tpu.memory_space<vmem>>, %arg3: memref<1x128xf32, #tpu.memory_space<vmem>>, %arg4: memref<128x128xbf16, #tpu.memory_space<vmem>>, %arg5: memref<1x128xf32, #tpu.memory_space<vmem>>, %arg6: memref<1x128xf32, #tpu.memory_space<vmem>>, %arg7: memref<1x128xf32, #tpu.memory_space<vmem>>, %arg8: memref<1x128xf32, #tpu.memory_space<vmem>>) attributes {dimension_semantics = [#tpu.dimension_semantics<parallel>], iteration_bounds = array<i64: 1>, scalar_prefetch = 0 : i64, scratch_operands = 0 : i64, tpu.core_type = #tpu.core_type<tc>, window_params = [{transform_indices = @transform_0, window_bounds = array<i64: 128, 22>}, {pipeline_mode = #tpu.pipeline_mode<synchronous>, transform_indices = @transform_1, window_bounds = array<i64: 22, 128>}, {pipeline_mode = #tpu.pipeline_mode<synchronous>, transform_indices = @transform_2, window_bounds = array<i64: 1, 128>}, {pipeline_mode = #tpu.pipeline_mode<synchronous>, transform_indices = @transform_3, window_bounds = array<i64: 128, 128>}, {pipeline_mode = #tpu.pipeline_mode<synchronous>, transform_indices = @transform_4, window_bounds = array<i64: 1, 128>}, {pipeline_mode = #tpu.pipeline_mode<synchronous>, transform_indices = @transform_5, window_bounds = array<i64: 1, 128>}, {pipeline_mode = #tpu.pipeline_mode<synchronous>, transform_indices = @transform_6, window_bounds = array<i64: 1, 128>}, {transform_indices = @transform_7, window_bounds = array<i64: 1, 128>}]} {
    %c0 = arith.constant 0 : index
    %c0_0 = arith.constant 0 : index
    %0 = vector.load %arg1[%c0, %c0_0] : memref<128x22xf32, #tpu.memory_space<vmem>>, vector<128x22xf32>
    %1 = arith.truncf %0 : vector<128x22xf32> to vector<128x22xbf16>
    %c0_1 = arith.constant 0 : index
    %c0_2 = arith.constant 0 : index
    %2 = vector.load %arg2[%c0_1, %c0_2] : memref<22x128xbf16, #tpu.memory_space<vmem>>, vector<22x128xbf16>
    %cst = arith.constant dense<0.000000e+00> : vector<128x128xf32>
    %3 = tpu.matmul %1, %2, %cst {dimension_numbers = #tpu.dot_dimension_numbers<[1], [0], [0], [1], [0, 0, 1, 1], [], []>} : vector<128x22xbf16>, vector<22x128xbf16>, vector<128x128xf32> -> vector<128x128xf32>
    %c0_3 = arith.constant 0 : index
    %c0_4 = arith.constant 0 : index
    %4 = vector.load %arg3[%c0_3, %c0_4] : memref<1x128xf32, #tpu.memory_space<vmem>>, vector<1x128xf32>
    %5 = vector.broadcast %4 : vector<1x128xf32> to vector<128x128xf32>
    %6 = arith.addf %3, %5 : vector<128x128xf32>
    %cst_5 = arith.constant 0.000000e+00 : f32
    %7 = vector.broadcast %cst_5 : f32 to vector<128x128xf32>
    %8 = arith.maximumf %6, %7 : vector<128x128xf32>
    %9 = arith.truncf %8 : vector<128x128xf32> to vector<128x128xbf16>
    %c0_6 = arith.constant 0 : index
    %c0_7 = arith.constant 0 : index
    %10 = vector.load %arg4[%c0_6, %c0_7] : memref<128x128xbf16, #tpu.memory_space<vmem>>, vector<128x128xbf16>
    %cst_8 = arith.constant dense<0.000000e+00> : vector<128x128xf32>
    %11 = tpu.matmul %9, %10, %cst_8 {dimension_numbers = #tpu.dot_dimension_numbers<[1], [0], [0], [1], [0, 0, 1, 1], [], []>} : vector<128x128xbf16>, vector<128x128xbf16>, vector<128x128xf32> -> vector<128x128xf32>
    %c0_9 = arith.constant 0 : index
    %c0_10 = arith.constant 0 : index
    %12 = vector.load %arg5[%c0_9, %c0_10] : memref<1x128xf32, #tpu.memory_space<vmem>>, vector<1x128xf32>
    %13 = vector.broadcast %12 : vector<1x128xf32> to vector<128x128xf32>
    %14 = arith.addf %11, %13 : vector<128x128xf32>
    %cst_11 = arith.constant 0.000000e+00 : f32
    %15 = vector.broadcast %cst_11 : f32 to vector<128x128xf32>
    %16 = arith.maximumf %14, %15 : vector<128x128xf32>
    %17 = vector.shape_cast %16 : vector<128x128xf32> to vector<1x128x128xf32>
    %c0_12 = arith.constant 0 : index
    %c0_13 = arith.constant 0 : index
    %18 = vector.load %arg6[%c0_12, %c0_13] : memref<1x128xf32, #tpu.memory_space<vmem>>, vector<1x128xf32>
    %19 = vector.shape_cast %18 : vector<1x128xf32> to vector<1x1x128xf32>
    %20 = vector.broadcast %19 : vector<1x1x128xf32> to vector<1x128x128xf32>
    %21 = arith.mulf %17, %20 : vector<1x128x128xf32>
    %cst_14 = arith.constant dense<0.000000e+00> : vector<1x128xf32>
    %22 = vector.multi_reduction <add>, %21, %cst_14 [2] : vector<1x128x128xf32> to vector<1x128xf32>
    %c0_15 = arith.constant 0 : index
    %c0_16 = arith.constant 0 : index
    %23 = vector.load %arg7[%c0_15, %c0_16] : memref<1x128xf32, #tpu.memory_space<vmem>>, vector<1x128xf32>
    %24 = arith.addf %22, %23 : vector<1x128xf32>
    %c0_17 = arith.constant 0 : index
    %c0_18 = arith.constant 0 : index
    %25 = vector.load %arg8[%c0_17, %c0_18] : memref<1x128xf32, #tpu.memory_space<vmem>>, vector<1x128xf32>
    tpu.vector_store %arg8[%c0_17, %c0_18], %24 {strides = array<i32>} : memref<1x128xf32, #tpu.memory_space<vmem>>, vector<1x128xf32>,
    return
  }
  func.func @transform_0(%arg0: i32) -> (i32, i32) {
    %c0_i32 = arith.constant 0 : i32
    %c0_i32_0 = arith.constant 0 : i32
    return %arg0, %c0_i32 : i32, i32
  }
  func.func @transform_1(%arg0: i32) -> (i32, i32) {
    %c0_i32 = arith.constant 0 : i32
    %c0_i32_0 = arith.constant 0 : i32
    %c0_i32_1 = arith.constant 0 : i32
    return %c0_i32, %c0_i32_0 : i32, i32
  }
  func.func @transform_2(%arg0: i32) -> (i32, i32) {
    %c0_i32 = arith.constant 0 : i32
    %c0_i32_0 = arith.constant 0 : i32
    %c0_i32_1 = arith.constant 0 : i32
    return %c0_i32, %c0_i32_0 : i32, i32
  }
  func.func @transform_3(%arg0: i32) -> (i32, i32) {
    %c0_i32 = arith.constant 0 : i32
    %c0_i32_0 = arith.constant 0 : i32
    %c0_i32_1 = arith.constant 0 : i32
    return %c0_i32, %c0_i32_0 : i32, i32
  }
  func.func @transform_4(%arg0: i32) -> (i32, i32) {
    %c0_i32 = arith.constant 0 : i32
    %c0_i32_0 = arith.constant 0 : i32
    %c0_i32_1 = arith.constant 0 : i32
    return %c0_i32, %c0_i32_0 : i32, i32
  }
  func.func @transform_5(%arg0: i32) -> (i32, i32) {
    %c0_i32 = arith.constant 0 : i32
    %c0_i32_0 = arith.constant 0 : i32
    %c0_i32_1 = arith.constant 0 : i32
    return %c0_i32, %c0_i32_0 : i32, i32
  }
  func.func @transform_6(%arg0: i32) -> (i32, i32) {
    %c0_i32 = arith.constant 0 : i32
    %c0_i32_0 = arith.constant 0 : i32
    %c0_i32_1 = arith.constant 0 : i32
    return %c0_i32, %c0_i32_0 : i32, i32
  }
  func.func @transform_7(%arg0: i32) -> (i32, i32) {
    %c0_i32 = arith.constant 0 : i32
    %c0_i32_0 = arith.constant 0 : i32
    return %arg0, %c0_i32 : i32, i32
  }
}

</mosaic_0001>

<bundles_post_ra>
// kernel: tpu_custom_call.1
= control target key start
LH: loop header
LB: loop body
LE: loop exit
PB: predicated region body
PF: predicated region fallthrough
CT: control target
= control target key end

     0   :  { %vm96_vm0 = vcmask 1042432   ;;  %vm71_vm1 = vcmask 179200   ;;  %s1149_s0 = inlined_call_operand.vmem [shape: f32[128,22], index: 0, kind: input, shape index: {}]   ;;  %s1150_s1 = inlined_call_operand.vmem [shape: bf16[22,128], index: 1, kind: input, shape index: {}]   ;;  %s1151_s2 = inlined_call_operand.vmem [shape: f32[1,128], index: 2, kind: input, shape index: {}]   ;;  %s1152_s3 = inlined_call_operand.vmem [shape: bf16[128,128], index: 3, kind: input, shape index: {}]   ;;  %s1153_s4 = inlined_call_operand.vmem [shape: f32[1,128], index: 4, kind: input, shape index: {}]   ;;  %s1154_s5 = inlined_call_operand.vmem [shape: f32[1,128], index: 5, kind: input, shape index: {}]   ;;  %s1155_s6 = inlined_call_operand.vmem [shape: f32[1,128], index: 6, kind: input, shape index: {}]   ;;  %s1156_s7 = inlined_call_operand.hbm [shape: f32[1,128], index: 7, kind: output, shape index: {}]  }
   0x1   :  { %v873_v0 = vld [vmem:[%s1150_s1] sm:$0xff]   ;;  %v874_v1 = vld [vmem:[%s1150_s1 + $0x8] ss:$0 sps:$4 sm:$0x77]   ;;  %v30_v5 = vld [vmem:[%s1149_s0 + $0x10] sm:$0xff] }
   0x2   :  { %v28_v2 = vld [vmem:[%s1149_s0] sm:$0xff]  ;;  %800 = vmatprep.subr.bf16.mxu0 %v873_v0  ;;  %v29_v3 = vld [vmem:[%s1149_s0 + $0x8] sm:$0xff]  ;;  %v31_v6 = vld [vmem:[%s1149_s0 + $0x18] sm:$0xff]  ;;  %v98_v7 = vsel %vm96_vm0, %v874_v1, 0 }
   0x3   :  { %801 = vmatpush3.bf16.msra.mxu0 %v873_v0  ;;  %v44_v4 = vpack.c.bf16 %v29_v3, %v28_v2  ;;  %v32_v8 = vld [vmem:[%s1149_s0 + $0x20] sm:$0xff]  ;;  %v33_v9 = vld [vmem:[%s1149_s0 + $0x28] sm:$0xff]  ;;  %v45_v10 = vpack.c.bf16 %v31_v6, %v30_v5  ;;  %v34_v14 = vld [vmem:[%s1149_s0 + $0x30] sm:$0xff] }
   0x4   :  { %868 = vmatprep.subr.msk.bf16.mxu0 %vm96_vm0, %v874_v1  ;;  %v46_v11 = vpack.c.bf16 %v33_v9, %v32_v8  ;;  %v875_v12 = vld [vmem:[%s1152_s3] sm:$0xff]   ;;  %v876_v13 = vld [vmem:[%s1152_s3 + $0x8] sm:$0xff]   ;;  %v35_v15 = vld [vmem:[%s1149_s0 + $0x38] sm:$0xff] }
   0x5   :  { %804 = vmatprep.mubr.msk.bf16.mxu0 %vm71_vm1, %v44_v4  ;;  %852 = vmatprep.subr.bf16.mxu1 %v875_v12  ;;  %v36_v16 = vld [vmem:[%s1149_s0 + $0x40] sm:$0xff]  ;;  %v37_v17 = vld [vmem:[%s1149_s0 + $0x48] sm:$0xff]  ;;  %v877_v18 = vld [vmem:[%s1152_s3 + $0x10] sm:$0xff]   ;;  %v47_v19 = vpack.c.bf16 %v35_v15, %v34_v14 }
   0x6   :  { %860 = vmatpush3.bf16.msra.mxu1 %v875_v12 }
   0x7   :  { %803 = vmatpush3.bf16.msra.mxu0 %v98_v7  ;;  %853 = vmatprep.subr.bf16.mxu1 %v876_v13 }
   0x8   :  { %820 = vmatprep.subr.bf16.mxu0 %v875_v12 }
   0xa   :  { %805 = vmatmul.mubr.msk.bf16.vlgmr.msra.gmra.mrb[0].mxu0 %vm71_vm1, %v45_v10  ;;  %861 = vmatpush3.bf16.msra.mxu1 %v876_v13 }
   0xb   :  { %808 = vmatprep.mubr.msk.bf16.mxu0 %vm71_vm1, %v46_v11  ;;  %821 = vmatpush3.bf16.msra.mxu0 %v875_v12 }
   0xc   :  { %822 = vmatprep.subr.bf16.mxu0 %v876_v13 }
   0xd   :  { %12 = vsyncpa [#allocation3], 0  ;;  %v48_v20 = vpack.c.bf16 %v37_v17, %v36_v16  ;;  %854 = vmatprep.subr.bf16.mxu1 %v877_v18  ;;  %v878_v21 = vld [vmem:[%s1152_s3 + $0x18] sm:$0xff]   ;;  %v38_v22 = vld [vmem:[%s1149_s0 + $0x50] sm:$0xff]  ;;  %vm636_vm2 = vcmask 130112   ;;  %vm643_vm3 = vcmask 195712  }
   0xe   :  { %862 = vmatpush3.bf16.msra.mxu1 %v877_v18  ;;  %v39_v23 = vld [vmem:[%s1149_s0 + $0x58] sm:$0xff]  ;;  %v40_v24 = vld [vmem:[%s1149_s0 + $0x60] sm:$0xff]  ;;  %v41_v25 = vld [vmem:[%s1149_s0 + $0x68] sm:$0xff]  ;;  %vm650_vm4 = vcmask 261312   ;;  %vm657_vm5 = vcmask 326912   ;;  %vm664_vm6 = vcmask 392512  }
   0xf   :  { %823 = vmatpush3.bf16.msra.mxu0 %v876_v13  ;;  %v879_v26 = vld [vmem:[%s1152_s3 + $0x20] sm:$0xff]   ;;  %855 = vmatprep.subr.bf16.mxu1 %v878_v21  ;;  %v49_v27 = vpack.c.bf16 %v39_v23, %v38_v22  ;;  %v50_v28 = vpack.c.bf16 %v41_v25, %v40_v24  ;;  %v880_v29 = vld [vmem:[%s1152_s3 + $0x28] sm:$0xff]   ;;  %v42_v30 = vld [vmem:[%s1149_s0 + $0x70] sm:$0xff]  ;;  %vm671_vm7 = vcmask 458112   ;;  %vm678_vm8 = vcmask 523712  }
  0x10   :  { %824 = vmatprep.subr.bf16.mxu0 %v877_v18  ;;  %v43_v31 = vld [vmem:[%s1149_s0 + $0x78] sm:$0xff]  ;;  %v881_v33 = vld [vmem:[%s1152_s3 + $0x30] sm:$0xff]   ;;  %v1038_v35 = vld [vmem:[%s1155_s6] ss:$0 sm:$0xff]  ;;  %vm685_vm9 = vcmask 589312   ;;  %vm692_vm10 = vcmask 654912  }
  0x11   :  { %v51_v32 = vpack.c.bf16 %v43_v31, %v42_v30  ;;  %v882_v34 = vld [vmem:[%s1152_s3 + $0x38] sm:$0xff]   ;;  %471 = vbcast.lane.b32.xlu1 %v1038_v35, 264  ;;  %467 = vbcast.lane.b32.xlu0 %v1038_v35, 256  ;;  %v752_v36 = vld [vmem:[%s1151_s2] ss:$0 sm:$0xff]  ;;  %vm699_vm11 = vcmask 720512  }
  0x12   :  { %809 = vmatmul.mubr.msk.bf16.gmra.mrb[4].mxu0 %vm71_vm1, %v47_v19  ;;  %863 = vmatpush3.bf16.msra.mxu1 %v878_v21  ;;  %vm706_vm12 = vcmask 786112   ;;  %vm713_vm13 = vcmask 851712   ;;  %vm720_vm14 = vcmask 917312   ;;  %vm727_vm15 = vcmask 982912  }
  0x13   :  { %812 = vmatprep.mubr.msk.bf16.mxu0 %vm71_vm1, %v48_v20  ;;  %825 = vmatpush3.bf16.msra.mxu0 %v877_v18  ;;  %vm734_vm0 = vcmask 1048512  }
  0x14   :  { %826 = vmatprep.subr.bf16.mxu0 %v878_v21  ;;  %856 = vmatprep.subr.bf16.mxu1 %v879_v26 }
  0x15   :  { %475 = vbcast.lane.b32.xlu1 %v1038_v35, 272  ;;  %483 = vbcast.lane.b32.xlu0 %v1038_v35, 288 }
  0x16   :  { %864 = vmatpush3.bf16.msra.mxu1 %v879_v26 }
  0x17   :  { %827 = vmatpush3.bf16.msra.mxu0 %v878_v21  ;;  %857 = vmatprep.subr.bf16.mxu1 %v880_v29 }
  0x18   :  { %828 = vmatprep.subr.bf16.mxu0 %v879_v26 }
  0x19   :  { %479 = vbcast.lane.b32.xlu1 %v1038_v35, 280  ;;  %491 = vbcast.lane.b32.xlu0 %v1038_v35, 304 }
  0x1a   :  { %813 = vmatmul.mubr.msk.bf16.gmra.mrb[8].mxu0 %vm71_vm1, %v49_v27  ;;  %865 = vmatpush3.bf16.msra.mxu1 %v880_v29 }
  0x1b   :  { %816 = vmatprep.mubr.msk.bf16.mxu0 %vm71_vm1, %v50_v28  ;;  %829 = vmatpush3.bf16.msra.mxu0 %v879_v26 }
  0x1c   :  { %830 = vmatprep.subr.bf16.mxu0 %v880_v29  ;;  %858 = vmatprep.subr.bf16.mxu1 %v881_v33 }
  0x1d   :  { %487 = vbcast.lane.b32.xlu1 %v1038_v35, 296  ;;  %499 = vbcast.lane.b32.xlu0 %v1038_v35, 320 }
  0x1e   :  { %866 = vmatpush3.bf16.msra.mxu1 %v881_v33 }
  0x1f   :  { %831 = vmatpush3.bf16.msra.mxu0 %v880_v29  ;;  %859 = vmatprep.subr.bf16.mxu1 %v882_v34  ;;  %v1060_v29 = vld [vmem:[%s1153_s4] ss:$0 sm:$0xff]  ;;  %s908_s4 = smov [#allocation2]  }
  0x20   :  { %832 = vmatprep.subr.bf16.mxu0 %v881_v33 }
  0x21   :  { %495 = vbcast.lane.b32.xlu1 %v1038_v35, 312  ;;  %507 = vbcast.lane.b32.xlu0 %v1038_v35, 336 }
  0x22   :  { %817 = vmatmul.mubr.msk.bf16.gmra.mrb[12].mxu0 %vm71_vm1, %v51_v32  ;;  %867 = vmatpush3.bf16.msra.mxu1 %v882_v34 }
  0x23   :  { %833 = vmatpush3.bf16.msra.mxu0 %v881_v33 }
  0x24   :  { %834 = vmatprep.subr.bf16.mxu0 %v882_v34 }
  0x25   :  { %503 = vbcast.lane.b32.xlu1 %v1038_v35, 328  ;;  %515 = vbcast.lane.b32.xlu0 %v1038_v35, 352 }
  0x27   :  { %835 = vmatpush3.bf16.msra.mxu0 %v882_v34 }
  0x29   :  { %511 = vbcast.lane.b32.xlu1 %v1038_v35, 344 }
  0x2d   :  { %519 = vbcast.lane.b32.xlu1 %v1038_v35, 360 }
  0xdd   :  { %v806_v37 = vpop.f32.mrb[0].mxu0 }
  0xde   :  { %v143_v38 = vadd.f32 %v806_v37, %v752_v36  ;;  %v134_v39 = vpop.f32.mrb[1].mxu0 }
  0xdf   :  { %v135_v40 = vadd.f32 %v752_v36, %v134_v39  ;;  %v807_v41 = vpop.f32.mrb[2].mxu0 }
  0xe0   :  { %v146_v42 = vadd.f32 %v807_v41, %v752_v36  ;;  %v137_v43 = vpop.f32.mrb[3].mxu0  ;;  %v199_v45 = vmax.f32 %v143_v38, 0.0 }
  0xe1   :  { %v138_v44 = vadd.f32 %v752_v36, %v137_v43  ;;  %v197_v47 = vmax.f32 %v135_v40, 0.0 }
  0xe2   :  { %v200_v46 = vmax.f32 %v146_v42, 0.0 }
  0xe3   :  { %v198_v48 = vmax.f32 %v138_v44, 0.0 }
  0xe4   :  { %v214_v49 = vpack.c.bf16 %v200_v46, %v199_v45 }
  0xe5   :  { %v213_v50 = vpack.c.bf16 %v198_v48, %v197_v47  ;;  %v810_v51 = vpop.f32.mrb[4].mxu0 }
  0xe6   :  { %v159_v52 = vadd.f32 %v810_v51, %v752_v36  ;;  %v150_v53 = vpop.f32.mrb[5].mxu0 }
  0xe7   :  { %v151_v54 = vadd.f32 %v752_v36, %v150_v53  ;;  %v811_v55 = vpop.f32.mrb[6].mxu0  ;;  %836 = vmatprep.mubr.bf16.mxu0 %v213_v50 }
  0xe8   :  { %v162_v56 = vadd.f32 %v811_v55, %v752_v36  ;;  %v153_v57 = vpop.f32.mrb[7].mxu0  ;;  %837 = vmatmul.mubr.bf16.vlgmr.msra.gmra.mrb[16].mxu0 %v214_v49  ;;  %v203_v59 = vmax.f32 %v159_v52, 0.0 }
  0xe9   :  { %v154_v58 = vadd.f32 %v752_v36, %v153_v57  ;;  %v201_v61 = vmax.f32 %v151_v54, 0.0 }
  0xea   :  { %v204_v60 = vmax.f32 %v162_v56, 0.0 }
  0xeb   :  { %v202_v62 = vmax.f32 %v154_v58, 0.0 }
  0xec   :  { %v216_v63 = vpack.c.bf16 %v204_v60, %v203_v59 }
  0xed   :  { %v814_v0 = vpop.f32.mrb[8].mxu0  ;;  %v215_v1 = vpack.c.bf16 %v202_v62, %v201_v61 }
  0xee   :  { %v175_v2 = vadd.f32 %v814_v0, %v752_v36  ;;  %v166_v3 = vpop.f32.mrb[9].mxu0 }
  0xef   :  { %v167_v4 = vadd.f32 %v752_v36, %v166_v3  ;;  %v815_v5 = vpop.f32.mrb[10].mxu0  ;;  %840 = vmatprep.mubr.bf16.mxu1 %v215_v1 }
  0xf0   :  { %v178_v6 = vadd.f32 %v815_v5, %v752_v36  ;;  %v169_v7 = vpop.f32.mrb[11].mxu0  ;;  %841 = vmatmul.mubr.bf16.vlgmr.msra.gmra.mrb[0].mxu1 %v216_v63  ;;  %v207_v9 = vmax.f32 %v175_v2, 0.0 }
  0xf1   :  { %v170_v8 = vadd.f32 %v752_v36, %v169_v7  ;;  %v205_v11 = vmax.f32 %v167_v4, 0.0 }
  0xf2   :  { %v208_v10 = vmax.f32 %v178_v6, 0.0 }
  0xf3   :  { %v206_v12 = vmax.f32 %v170_v8, 0.0 }
  0xf4   :  { %v218_v13 = vpack.c.bf16 %v208_v10, %v207_v9 }
  0xf5   :  { %v217_v14 = vpack.c.bf16 %v206_v12, %v205_v11  ;;  %v818_v15 = vpop.f32.mrb[12].mxu0  ;;  %v907_v12 = vmov 0  }
  0xf6   :  { %v191_v16 = vadd.f32 %v818_v15, %v752_v36  ;;  %v182_v17 = vpop.f32.mrb[13].mxu0  ;;  %871 = vset.pattern.permute.xlu1 %v907_v12  ;;  %872 = vset.pattern.permute.xlu0 %v907_v12 }
  0xf7   :  { %v183_v18 = vadd.f32 %v752_v36, %v182_v17  ;;  %v819_v19 = vpop.f32.mrb[14].mxu0  ;;  %844 = vmatprep.mubr.bf16.mxu1 %v217_v14 }
  0xf8   :  { %v194_v20 = vadd.f32 %v819_v19, %v752_v36  ;;  %v185_v21 = vpop.f32.mrb[15].mxu0  ;;  %845 = vmatmul.mubr.bf16.gmra.mrb[4].mxu1 %v218_v13  ;;  %v211_v23 = vmax.f32 %v191_v16, 0.0 }
  0xf9   :  { %v186_v22 = vadd.f32 %v752_v36, %v185_v21  ;;  %v209_v25 = vmax.f32 %v183_v18, 0.0  ;;  %v1067_v36 = vld [vmem:[%s1154_s5] ss:$0 sm:$0xff]  ;;  %s744_s5 = sshll.u32 %s908_s4, 4  ;;  %s745_s5 = int_to_ptr.vmem [resolvable:$true] %s744_s5 }
  0xfa   :  { %v212_v24 = vmax.f32 %v194_v20, 0.0  ;;  %s883_s9 = scalar_lea.vmem %s745_s5, 16  ;;  %s887_s10 = scalar_lea.vmem %s745_s5, 32 }
  0xfb   :  { %v210_v26 = vmax.f32 %v186_v22, 0.0  ;;  %p884_p0 = scmp.ne.s32.totalorder %s745_s5, %s883_s9  ;;  %p888_p1 = scmp.lt.s32.totalorder %s745_s5, %s745_s5 }
  0xfc   :  { %v220_v27 = vpack.c.bf16 %v212_v24, %v211_v23  ;;  %p889_p2 = scmp.lt.s32.totalorder %s887_s10, %s883_s9 }
  0xfd   :  { %v219_v28 = vpack.c.bf16 %v210_v26, %v209_v25 }
  0xfe   :  { %p890_p3 = por %p889_p2, %p888_p1 }
  0xff   :  { %848 = vmatprep.mubr.bf16.mxu1 %v219_v28 }
 0x100   :  { %849 = vmatmul.mubr.bf16.gmra.mrb[8].mxu1 %v220_v27  ;;  %p891_p4 = pnand %p890_p3, %p884_p0 }
 0x1bb   :  { %v838_v30 = vpop.f32.mrb[16].mxu0 }
 0x1bc   :  { %v335_v31 = vadd.f32 %v838_v30, %v1060_v29  ;;  %v326_v32 = vpop.f32.mrb[17].mxu0 }
 0x1bd   :  { %v327_v33 = vadd.f32 %v1060_v29, %v326_v32  ;;  %v839_v34 = vpop.f32.mrb[18].mxu0 }
 0x1be   :  { %v391_v37 = vmax.f32 %v335_v31, 0.0  ;;  %v338_v38 = vadd.f32 %v839_v34, %v1060_v29  ;;  %v329_v39 = vpop.f32.mrb[19].mxu0 }
 0x1bf   :  { %v389_v40 = vmax.f32 %v327_v33, 0.0  ;;  %v330_v41 = vadd.f32 %v1060_v29, %v329_v39 }
 0x1c0   :  { %v392_v42 = vmax.f32 %v338_v38, 0.0  ;;  %v414_v43 = vmul.f32 %v1067_v36, %v391_v37  ;;  %v468_v38 = vpop.permute.xlu0 %467 }
 0x1c1   :  { %v390_v44 = vmax.f32 %v330_v41, 0.0  ;;  %v412_v45 = vmul.f32 %v1067_v36, %v389_v40 }
 0x1c2   :  { %432 = vadd.xlane.f32.xlu1 %v414_v43  ;;  %v415_v49 = vmul.f32 %v1067_v36, %v392_v42 }
 0x1c3   :  { %v842_v46 = vpop.f32.mrb[0].mxu1  ;;  %428 = vadd.xlane.f32.xlu0 %v412_v45  ;;  %v413_v52 = vmul.f32 %v1067_v36, %v390_v44 }
 0x1c4   :  { %v351_v47 = vadd.f32 %v842_v46, %v1060_v29  ;;  %v342_v48 = vpop.f32.mrb[1].mxu1  ;;  %v484_v40 = vpop.permute.xlu0 %483 }
 0x1c5   :  { %v343_v50 = vadd.f32 %v1060_v29, %v342_v48  ;;  %v843_v51 = vpop.f32.mrb[2].mxu1 }
 0x1c6   :  { %v395_v53 = vmax.f32 %v351_v47, 0.0  ;;  %v354_v54 = vadd.f32 %v843_v51, %v1060_v29  ;;  %v345_v55 = vpop.f32.mrb[3].mxu1  ;;  %434 = vadd.xlane.f32.xlu1 %v415_v49 }
 0x1c7   :  { %v346_v56 = vadd.f32 %v1060_v29, %v345_v55  ;;  %430 = vadd.xlane.f32.xlu0 %v413_v52  ;;  %v393_v59 = vmax.f32 %v343_v50, 0.0 }
 0x1c8   :  { %v396_v57 = vmax.f32 %v354_v54, 0.0  ;;  %v418_v58 = vmul.f32 %v1067_v36, %v395_v53  ;;  %v492_v42 = vpop.permute.xlu0 %491 }
 0x1c9   :  { %v394_v60 = vmax.f32 %v346_v56, 0.0  ;;  %v416_v3 = vmul.f32 %v1067_v36, %v393_v59 }
 0x1ca   :  { %v419_v61 = vmul.f32 %v1067_v36, %v396_v57 }
 0x1cb   :  { %v846_v62 = vpop.f32.mrb[4].mxu1  ;;  %440 = vadd.xlane.f32.xlu0 %v418_v58  ;;  %v417_v7 = vmul.f32 %v1067_v36, %v394_v60 }
 0x1cc   :  { %v367_v63 = vadd.f32 %v846_v62, %v1060_v29  ;;  %v358_v0 = vpop.f32.mrb[5].mxu1  ;;  %442 = vadd.xlane.f32.xlu1 %v419_v61  ;;  %v500_v44 = vpop.permute.xlu0 %499 }
 0x1cd   :  { %v359_v1 = vadd.f32 %v1060_v29, %v358_v0  ;;  %v847_v2 = vpop.f32.mrb[6].mxu1 }
 0x1ce   :  { %v399_v4 = vmax.f32 %v367_v63, 0.0  ;;  %v370_v5 = vadd.f32 %v847_v2, %v1060_v29  ;;  %v361_v6 = vpop.f32.mrb[7].mxu1 }
 0x1cf   :  { %v362_v8 = vadd.f32 %v1060_v29, %v361_v6  ;;  %436 = vadd.xlane.f32.xlu0 %v416_v3  ;;  %v397_v11 = vmax.f32 %v359_v1, 0.0 }
 0x1d0   :  { %v400_v9 = vmax.f32 %v370_v5, 0.0  ;;  %438 = vadd.xlane.f32.xlu1 %v417_v7  ;;  %v422_v10 = vmul.f32 %v1067_v36, %v399_v4  ;;  %v508_v46 = vpop.permute.xlu0 %507 }
 0x1d1   :  { %v398_v13 = vmax.f32 %v362_v8, 0.0  ;;  %v420_v20 = vmul.f32 %v1067_v36, %v397_v11 }
 0x1d2   :  { %v423_v14 = vmul.f32 %v1067_v36, %v400_v9 }
 0x1d3   :  { %v850_v15 = vpop.f32.mrb[8].mxu1  ;;  %448 = vadd.xlane.f32.xlu0 %v422_v10  ;;  %v421_v24 = vmul.f32 %v1067_v36, %v398_v13 }
 0x1d4   :  { %v383_v16 = vadd.f32 %v850_v15, %v1060_v29  ;;  %v374_v17 = vpop.f32.mrb[9].mxu1  ;;  %450 = vadd.xlane.f32.xlu1 %v423_v14 }
 0x1d5   :  { %v375_v18 = vadd.f32 %v1060_v29, %v374_v17  ;;  %v851_v19 = vpop.f32.mrb[10].mxu1  ;;  %v625_v17 = vlaneseq }
 0x1d6   :  { %v403_v21 = vmax.f32 %v383_v16, 0.0  ;;  %v386_v22 = vadd.f32 %v851_v19, %v1060_v29  ;;  %v377_v23 = vpop.f32.mrb[11].mxu1 }
 0x1d7   :  { %v378_v25 = vadd.f32 %v1060_v29, %v377_v23  ;;  %444 = vadd.xlane.f32.xlu0 %v420_v20  ;;  %v401_v28 = vmax.f32 %v375_v18, 0.0  ;;  %v472_v29 = vpop.permute.xlu1 %471  ;;  %v1101_v18 = vand.u32 127, %v625_v17  ;;  %v1104_v20 = vshrl.u32 %v625_v17, 7 }
 0x1d8   :  { %v404_v26 = vmax.f32 %v386_v22, 0.0  ;;  %446 = vadd.xlane.f32.xlu1 %v421_v24  ;;  %v426_v27 = vmul.f32 %v1067_v36, %v403_v21 }
 0x1d9   :  { %v402_v30 = vmax.f32 %v378_v25, 0.0  ;;  %v424_v32 = vmul.f32 %v1067_v36, %v401_v28  ;;  %v631_v19 = vadd.s32 4294967288, %v1101_v18  ;;  %v638_v23 = vadd.s32 4294967280, %v1101_v18 }
 0x1da   :  { %v427_v31 = vmul.f32 %v1067_v36, %v404_v26  ;;  %v629_v25 = vsub.s32 %v1101_v18, %v1104_v20 }
 0x1db   :  { %456 = vadd.xlane.f32.xlu0 %v426_v27  ;;  %v425_v33 = vmul.f32 %v1067_v36, %v402_v30  ;;  %v476_v34 = vpop.permute.xlu1 %475  ;;  %v516_v36 = vpop.permute.xlu0 %515  ;;  %v634_v24 = vsub.s32 %v631_v19, %v1104_v20  ;;  %v645_v27 = vadd.s32 4294967272, %v1101_v18  ;;  %v641_v30 = vsub.s32 %v638_v23, %v1104_v20 }
 0x1dc   :  { %458 = vadd.xlane.f32.xlu1 %v427_v31 }
 0x1df   :  { %452 = vadd.xlane.f32.xlu0 %v424_v32  ;;  %v480_v37 = vpop.permute.xlu1 %479  ;;  %v652_v32 = vadd.s32 4294967264, %v1101_v18 }
 0x1e0   :  { %454 = vadd.xlane.f32.xlu1 %v425_v33 }
 0x1e3   :  { %v488_v39 = vpop.permute.xlu1 %487 }
 0x1e7   :  { %v496_v41 = vpop.permute.xlu1 %495 }
 0x1eb   :  { %v504_v43 = vpop.permute.xlu1 %503 }
 0x1ef   :  { %v512_v45 = vpop.permute.xlu1 %511 }
 0x1f1   :  { %527 = vbcast.lane.b32.xlu1 %v1038_v35, 376 }
 0x1f3   :  { %v520_v47 = vpop.permute.xlu1 %519 }
 0x1f5   :  { %523 = vbcast.lane.b32.xlu0 %v1038_v35, 368 }
 0x24f   :  { %v433_v48 = vpop.xlane.xlu1 %432 }
 0x250   :  { %v547_v49 = vadd.f32 %v476_v34, %v433_v48  ;;  %v429_v50 = vpop.xlane.xlu0 %428 }
 0x251   :  { %v545_v51 = vadd.f32 %v468_v38, %v429_v50  ;;  %v680_v50 = vadd.s32 4294967232, %v1101_v18 }
 0x252   :  { %584 = vperm.xlu1 %871, %v547_v49  }
 0x253   :  { %v435_v35 = vpop.xlane.xlu1 %434  ;;  %578 = vperm.xlu0 %872, %v545_v51  }
 0x254   :  { %v548_v52 = vadd.f32 %v480_v37, %v435_v35  ;;  %v431_v53 = vpop.xlane.xlu0 %430  ;;  %v648_v37 = vsub.s32 %v645_v27, %v1104_v20 }
 0x255   :  { %v546_v54 = vadd.f32 %v472_v29, %v431_v53  ;;  %v659_v29 = vadd.s32 4294967256, %v1101_v18 }
 0x257   :  { %587 = vperm.xlu0 %872, %v548_v52   ;;  %581 = vperm.xlu1 %871, %v546_v54   ;;  %v687_v52 = vadd.s32 4294967224, %v1101_v18 }
 0x258   :  { %v441_v55 = vpop.xlane.xlu0 %440 }
 0x259   :  { %v551_v56 = vadd.f32 %v492_v42, %v441_v55  ;;  %v443_v57 = vpop.xlane.xlu1 %442  ;;  %v655_v42 = vsub.s32 %v652_v32, %v1104_v20 }
 0x25a   :  { %v552_v58 = vadd.f32 %v496_v41, %v443_v57 }
 0x25b   :  { %596 = vperm.xlu1 %871, %v551_v56  }
 0x25c   :  { %599 = vperm.xlu0 %872, %v552_v58   ;;  %v437_v59 = vpop.xlane.xlu0 %436  ;;  %v694_v58 = vadd.s32 4294967216, %v1101_v18 }
 0x25d   :  { %v549_v60 = vadd.f32 %v484_v40, %v437_v59  ;;  %v439_v61 = vpop.xlane.xlu1 %438  ;;  %v666_v40 = vadd.s32 4294967248, %v1101_v18 }
 0x25e   :  { %v550_v62 = vadd.f32 %v488_v39, %v439_v61  ;;  %v690_v61 = vsub.s32 %v687_v52, %v1104_v20 }
 0x25f   :  { %590 = vperm.xlu1 %871, %v549_v60   ;;  %v683_v60 = vsub.s32 %v680_v50, %v1104_v20 }
 0x260   :  { %593 = vperm.xlu0 %872, %v550_v62   ;;  %v449_v63 = vpop.xlane.xlu0 %448 }
 0x261   :  { %v555_v0 = vadd.f32 %v508_v46, %v449_v63  ;;  %v451_v1 = vpop.xlane.xlu1 %450  ;;  %v673_v46 = vadd.s32 4294967240, %v1101_v18 }
 0x262   :  { %v556_v2 = vadd.f32 %v512_v45, %v451_v1 }
 0x263   :  { %608 = vperm.xlu1 %871, %v555_v0   ;;  %v676_v54 = vsub.s32 %v673_v46, %v1104_v20  ;;  %v701_v0 = vadd.s32 4294967208, %v1101_v18 }
 0x264   :  { %611 = vperm.xlu0 %872, %v556_v2   ;;  %v445_v3 = vpop.xlane.xlu0 %444  ;;  %v697_v2 = vsub.s32 %v694_v58, %v1104_v20 }
 0x265   :  { %v553_v4 = vadd.f32 %v500_v44, %v445_v3  ;;  %v447_v5 = vpop.xlane.xlu1 %446 }
 0x266   :  { %v554_v6 = vadd.f32 %v504_v43, %v447_v5  ;;  %v662_v43 = vsub.s32 %v659_v29, %v1104_v20  ;;  %v708_v5 = vadd.s32 4294967200, %v1101_v18 }
 0x267   :  { %602 = vperm.xlu1 %871, %v553_v4  }
 0x268   :  { %605 = vperm.xlu0 %872, %v554_v6   ;;  %v457_v7 = vpop.xlane.xlu0 %456 }
 0x269   :  { %v459_v8 = vpop.xlane.xlu1 %458 }
 0x26c   :  { %v453_v9 = vpop.xlane.xlu0 %452 }
 0x26d   :  { %v557_v10 = vadd.f32 %v516_v36, %v453_v9  ;;  %v455_v11 = vpop.xlane.xlu1 %454  ;;  %v669_v36 = vsub.s32 %v666_v40, %v1104_v20 }
 0x26e   :  { %v558_v12 = vadd.f32 %v520_v47, %v455_v11 }
 0x26f   :  { %614 = vperm.xlu1 %871, %v557_v10   ;;  %v704_v10 = vsub.s32 %v701_v0, %v1104_v20 }
 0x270   :  { %617 = vperm.xlu0 %872, %v558_v12   ;;  %v524_v13 = vpop.permute.xlu0 %523 }
 0x271   :  { %v559_v14 = vadd.f32 %v524_v13, %v457_v7  ;;  %v528_v15 = vpop.permute.xlu1 %527  ;;  %v711_v13 = vsub.s32 %v708_v5, %v1104_v20 }
 0x272   :  { %v560_v16 = vadd.f32 %v528_v15, %v459_v8  ;;  %v715_v8 = vadd.s32 4294967192, %v1101_v18 }
 0x273   :  { %620 = vperm.xlu1 %871, %v559_v14   ;;  %v722_v14 = vadd.s32 4294967184, %v1101_v18 }
 0x274   :  { %623 = vperm.xlu0 %872, %v560_v16   ;;  %v718_v15 = vsub.s32 %v715_v8, %v1104_v20  ;;  %v729_v16 = vadd.s32 4294967176, %v1101_v18 }
 0x276   :  { %v732_v27 = vsub.s32 %v729_v16, %v1104_v20 }
 0x2d1   :  { %v585_v21 = vpop.permute.xlu1 %584 }
 0x2d2   :  { %v579_v22 = vpop.permute.xlu0 %578  ;;  %v642_v39 = vrot.slane %v585_v21, %v641_v30 }
 0x2d3   :  { %v630_v33 = vrot.slane %v579_v22, %v629_v25 }
 0x2d6   :  { %v582_v26 = vpop.permute.xlu1 %581  ;;  %v588_v28 = vpop.permute.xlu0 %587 }
 0x2d7   :  { %v635_v31 = vrot.slane %v582_v26, %v634_v24  ;;  %v649_v45 = vrot.slane %v588_v28, %v648_v37  ;;  %v725_v24 = vsub.s32 %v722_v14, %v1104_v20 }
 0x2d9   :  { %v637_v34 = vsel %vm636_vm2, %v635_v31, %v630_v33 }
 0x2da   :  { %v597_v38 = vpop.permute.xlu1 %596  ;;  %v644_v44 = vsel %vm643_vm3, %v642_v39, %v637_v34 }
 0x2db   :  { %v600_v41 = vpop.permute.xlu0 %599  ;;  %v651_v51 = vsel %vm650_vm4, %v649_v45, %v644_v44  ;;  %v670_v57 = vrot.slane %v597_v38, %v669_v36 }
 0x2dc   :  { %v677_v63 = vrot.slane %v600_v41, %v676_v54 }
 0x2de   :  { %v591_v47 = vpop.permute.xlu1 %590 }
 0x2df   :  { %v656_v48 = vrot.slane %v591_v47, %v655_v42  ;;  %v594_v49 = vpop.permute.xlu0 %593 }
 0x2e0   :  { %v663_v35 = vrot.slane %v594_v49, %v662_v43 }
 0x2e1   :  { %v658_v53 = vsel %vm657_vm5, %v656_v48, %v651_v51 }
 0x2e2   :  { %v665_v55 = vsel %vm664_vm6, %v663_v35, %v658_v53  ;;  %v609_v56 = vpop.permute.xlu1 %608 }
 0x2e3   :  { %v612_v59 = vpop.permute.xlu0 %611  ;;  %v672_v62 = vsel %vm671_vm7, %v670_v57, %v665_v55  ;;  %v698_v12 = vrot.slane %v609_v56, %v697_v2 }
 0x2e4   :  { %v679_v6 = vsel %vm678_vm8, %v677_v63, %v672_v62  ;;  %v705_v19 = vrot.slane %v612_v59, %v704_v10 }
 0x2e6   :  { %v603_v1 = vpop.permute.xlu1 %602 }
 0x2e7   :  { %v684_v3 = vrot.slane %v603_v1, %v683_v60  ;;  %v606_v4 = vpop.permute.xlu0 %605 }
 0x2e8   :  { %v691_v7 = vrot.slane %v606_v4, %v690_v61 }
 0x2e9   :  { %v686_v9 = vsel %vm685_vm9, %v684_v3, %v679_v6 }
 0x2ea   :  { %v693_v11 = vsel %vm692_vm10, %v691_v7, %v686_v9 }
 0x2eb   :  { %v700_v17 = vsel %vm699_vm11, %v698_v12, %v693_v11 }
 0x2ec   :  { %v707_v25 = vsel %vm706_vm12, %v705_v19, %v700_v17 }
 0x2ee   :  { %v615_v21 = vpop.permute.xlu1 %614 }
 0x2ef   :  { %v712_v22 = vrot.slane %v615_v21, %v711_v13  ;;  %v618_v23 = vpop.permute.xlu0 %617 }
 0x2f0   :  { %v719_v26 = vrot.slane %v618_v23, %v718_v15 }
 0x2f1   :  { %v714_v28 = vsel %vm713_vm13, %v712_v22, %v707_v25 }
 0x2f2   :  { %v621_v30 = vpop.permute.xlu1 %620  ;;  %v721_v32 = vsel %vm720_vm14, %v719_v26, %v714_v28 }
 0x2f3   :  { %v726_v18 = vrot.slane %v621_v30, %v725_v24  ;;  %v624_v31 = vpop.permute.xlu0 %623 }
 0x2f4   :  { %v733_v33 = vrot.slane %v624_v31, %v732_v27 }
 0x2f5   :  { %v728_v29 = vsel %vm727_vm15, %v726_v18, %v721_v32 }
 0x2f6   :  { %v735_v34 = vsel %vm734_vm0, %v733_v33, %v728_v29 }
 0x2f7   :  { %737 = vst [vmem:[#allocation2] sm:$0x1] %v735_v34 }
 0x2f8   :  { %894 = shalt.err (!%p891_p4)
}
 0x2f9   :  { %s895_s1 = scalar_lea.hbm %s1156_s7, 16 }
 0x2fa   :  { %p896_p5 = scmp.ne.s32.totalorder %s1156_s7, %s895_s1  ;;  %p899_p6 = scmp.lt.u32.totalorder %s895_s1, %s1156_s7 }
 0x2fc   :  { %p901_p7 = pnand %p899_p6, %p896_p5 }
 0x2fe   :  { %904 = shalt.err (!%p901_p7)
}
 0x2ff   :  { %747 = dma.vmem_to_hbm [thread:$0]  %s745_s5, 16, %s1156_s7, [#allocation3]  }
 0x300   :  { %905 = dma.done.wait [#allocation3], 16  }
 0x301   :  { %906 = vsyncadd [#allocation3], 4294967280 }
 0x302   :  { %751 = vsyncpa [#allocation3], 1 }

</bundles_post_ra>
